<compile_context>
chip_gen: v7x
topology: tpu7x:2x2x1
jax: 0.10.0
libtpu: 0.0.40
codegen_flags: <defaults>
</compile_context>

<pallas_src>
import functools

import jax
import jax.numpy as jnp
from jax.experimental import pallas as pl
from jax.experimental.pallas import tpu as pltpu

BN_EPS = 1e-5
LANE = 128
SUBLANE = 8


def prep_conv_weight(weight):
    """(OC, C, KH, KW) -> (OC, KH*KW*CP) with channels zero-padded to CP=8.

    Done ONCE at parameter-init time, outside the per-step jit path."""
    OC, C, KH, KW = weight.shape
    CP = max(SUBLANE, ((C + SUBLANE - 1) // SUBLANE) * SUBLANE)
    w = jnp.transpose(weight, (0, 2, 3, 1))                 # (OC, KH, KW, C)
    w = jnp.pad(w, ((0, 0), (0, 0), (0, 0), (0, CP - C)))   # (OC, KH, KW, CP)
    return w.reshape(OC, KH * KW * CP).astype(jnp.float32)


@functools.partial(jax.jit, static_argnames=("kh", "kw"))
def conv_bn_forward(x_nchw, w_mat, *, kh, kw):
    """Conv2d (stride 1, valid, bias dropped) -> BatchNorm2d (batch stats)."""
    N, C, H, W = x_nchw.shape
    OC = w_mat.shape[0]
    CP = w_mat.shape[1] // (kh * kw)          # channels padded to sublane tile
    OH, OW = H - kh + 1, W - kw + 1
    NHW = N * H * W                           # flat (n, h, w) index length
    M = N * OH * OW                           # number of valid conv outputs
    max_shift = (kh - 1) * W + (kw - 1)

    # Lane-dense widths (multiples of 128): output width and shifted-input width.
    L_out = ((max(NHW, 1) + LANE - 1) // LANE) * LANE
    L_in = ((L_out + max_shift + LANE - 1) // LANE) * LANE

    # Cheap layout prep (no 9x im2col expansion, no bias, no mask operand).
    x_flat = jnp.transpose(x_nchw, (1, 0, 2, 3)).reshape(C, NHW)
    x_flat = jnp.pad(x_flat.astype(jnp.float32),
                     ((0, CP - C), (0, L_in - NHW)))        # (CP, L_in)

    inv_m = 1.0 / M

    def kernel(x_ref, w_ref, o_ref):
        # x_ref: (CP, L_in)   w_ref: (OC, kh*kw*CP)   o_ref: (OC, L_out)
        # Stack the kh*kw lane-shifted slabs along the sublane axis (each slab
        # is a full (8,128)-tile-aligned block) -> ONE MXU matmul.
        slabs = []
        for i in range(kh):
            for j in range(kw):
                slabs.append(x_ref[:, pl.ds(i * W + j, L_out)])   # (CP, L_out)
        xs = jnp.concatenate(slabs, axis=0)                       # (kh*kw*CP, L_out)
        acc = jnp.dot(w_ref[...], xs,
                      preferred_element_type=jnp.float32)         # (OC, L_out)
        # No conv-bias add: exactly cancelled by the BN mean subtraction.

        # Validity mask regenerated in-kernel: flat position q = n*H*W + h*W + w
        # is a valid conv-output location iff h < OH and w < OW (the window
        # stays inside image n).  Expressed as N*OH lane-interval compares.
        q = jax.lax.broadcasted_iota(jnp.int32, (1, L_out), 1)
        valid = jnp.zeros((1, L_out), dtype=jnp.bool_)
        for n in range(N):
            for h in range(OH):
                s = n * H * W + h * W
                valid = valid | ((q >= s) & (q < s + OW))
        msk = valid.astype(jnp.float32)

        # BatchNorm2d training mode: biased per-channel stats over the M valid
        # columns; gamma=1 / beta=0 -> identity affine.
        mean = jnp.sum(acc * msk, axis=-1, keepdims=True) * inv_m   # (OC, 1)
        cen = (acc - mean) * msk
        var = jnp.sum(cen * cen, axis=-1, keepdims=True) * inv_m    # (OC, 1)
        o_ref[...] = (acc - mean) * jax.lax.rsqrt(var + BN_EPS)

    out_flat = pl.pallas_call(
        kernel,
        out_shape=jax.ShapeDtypeStruct((OC, L_out), jnp.float32),
        in_specs=[
            pl.BlockSpec(memory_space=pltpu.MemorySpace.VMEM),
            pl.BlockSpec(memory_space=pltpu.MemorySpace.VMEM),
        ],
        out_specs=pl.BlockSpec(memory_space=pltpu.MemorySpace.VMEM),
    )(x_flat, w_mat)

    # (OC, L_out) -> NCHW, keeping only the valid output positions.
    out = out_flat[:, :NHW].reshape(OC, N, H, W)[:, :, :OH, :OW]
    return jnp.transpose(out, (1, 0, 2, 3))


if __name__ == "__main__":
    key = jax.random.PRNGKey(0)
    kx, kw, kb = jax.random.split(key, 3)

    # Shapes from the PyTorch module: Conv2d(2, 4, 3) applied to (2, 2, 4, 4).
    x1 = jax.random.normal(kx, (2, 2, 4, 4), dtype=jnp.float32)        # NCHW
    conv_weight = jax.random.normal(kw, (4, 2, 3, 3), dtype=jnp.float32)
    conv_bias = jax.random.normal(kb, (4,), dtype=jnp.float32)
    # bn.running_mean / running_var of the module are unused by the forward
    # output (module stays in training mode -> batch statistics).

    # Weight transform done once, outside the jitted per-step path.
    w_mat = prep_conv_weight(conv_weight)

    out = conv_bn_forward(x1, w_mat, kh=3, kw=3)
    jax.block_until_ready(out)
    assert out.shape == (2, 4, 2, 2)

    # Reference: plain XLA conv (WITH the bias) + training-mode BatchNorm.  The
    # bias is algebraically cancelled by the BN mean subtraction, so the
    # bias-free fused kernel must match it.
    y = jax.lax.conv_general_dilated(
        x1, conv_weight, window_strides=(1, 1), padding="VALID",
        dimension_numbers=("NCHW", "OIHW", "NCHW"),
        precision=jax.lax.Precision.HIGHEST)
    y = y + conv_bias.reshape(1, 4, 1, 1)
    mu = jnp.mean(y, axis=(0, 2, 3), keepdims=True)
    va = jnp.mean((y - mu) ** 2, axis=(0, 2, 3), keepdims=True)
    ref = (y - mu) * jax.lax.rsqrt(va + BN_EPS)
    assert float(jnp.max(jnp.abs(out - ref))) < 1e-4

    print("KERNEL_OK")
</pallas_src>

<mosaic_0001>
module attributes {stable_mosaic.version = 11 : i64} {
  func.func @kernel(%arg0: memref<8x256xf32, #tpu.memory_space<vmem>>, %arg1: memref<4x72xf32, #tpu.memory_space<vmem>>, %arg2: memref<4x128xf32, #tpu.memory_space<vmem>>) attributes {dimension_semantics = [], scalar_prefetch = 0 : i64, scratch_operands = 0 : i64, tpu.core_type = #tpu.core_type<tc>} {
    %c0 = arith.constant 0 : index
    %c0_0 = arith.constant 0 : index
    %0 = vector.load %arg0[%c0, %c0_0] : memref<8x256xf32, #tpu.memory_space<vmem>>, vector<8x128xf32>
    %c0_1 = arith.constant 0 : index
    %c1 = arith.constant 1 : index
    %1 = vector.load %arg0[%c0_1, %c1] : memref<8x256xf32, #tpu.memory_space<vmem>>, vector<8x128xf32>
    %c0_2 = arith.constant 0 : index
    %c2 = arith.constant 2 : index
    %2 = vector.load %arg0[%c0_2, %c2] : memref<8x256xf32, #tpu.memory_space<vmem>>, vector<8x128xf32>
    %c0_3 = arith.constant 0 : index
    %c4 = arith.constant 4 : index
    %3 = vector.load %arg0[%c0_3, %c4] : memref<8x256xf32, #tpu.memory_space<vmem>>, vector<8x128xf32>
    %c0_4 = arith.constant 0 : index
    %c5 = arith.constant 5 : index
    %4 = vector.load %arg0[%c0_4, %c5] : memref<8x256xf32, #tpu.memory_space<vmem>>, vector<8x128xf32>
    %c0_5 = arith.constant 0 : index
    %c6 = arith.constant 6 : index
    %5 = vector.load %arg0[%c0_5, %c6] : memref<8x256xf32, #tpu.memory_space<vmem>>, vector<8x128xf32>
    %c0_6 = arith.constant 0 : index
    %c8 = arith.constant 8 : index
    %6 = vector.load %arg0[%c0_6, %c8] : memref<8x256xf32, #tpu.memory_space<vmem>>, vector<8x128xf32>
    %c0_7 = arith.constant 0 : index
    %c9 = arith.constant 9 : index
    %7 = vector.load %arg0[%c0_7, %c9] : memref<8x256xf32, #tpu.memory_space<vmem>>, vector<8x128xf32>
    %c0_8 = arith.constant 0 : index
    %c10 = arith.constant 10 : index
    %8 = vector.load %arg0[%c0_8, %c10] : memref<8x256xf32, #tpu.memory_space<vmem>>, vector<8x128xf32>
    %9 = tpu.concatenate %0, %1, %2, %3, %4, %5, %6, %7, %8 in 0 : vector<8x128xf32>, vector<8x128xf32>, vector<8x128xf32>, vector<8x128xf32>, vector<8x128xf32>, vector<8x128xf32>, vector<8x128xf32>, vector<8x128xf32>, vector<8x128xf32> -> vector<72x128xf32>
    %c0_9 = arith.constant 0 : index
    %c0_10 = arith.constant 0 : index
    %10 = vector.load %arg1[%c0_9, %c0_10] : memref<4x72xf32, #tpu.memory_space<vmem>>, vector<4x72xf32>
    %cst = arith.constant dense<0.000000e+00> : vector<4x128xf32>
    %11 = tpu.matmul %10, %9, %cst {dimension_numbers = #tpu.dot_dimension_numbers<[1], [0], [0], [1], [0, 0, 1, 1], [], []>} : vector<4x72xf32>, vector<72x128xf32>, vector<4x128xf32> -> vector<4x128xf32>
    %12 = tpu.iota {dimensions = array<i32: 1>} : vector<1x128xi32>
    %false = arith.constant false
    %13 = vector.broadcast %false : i1 to vector<1x128xi1>
    %c0_i32 = arith.constant 0 : i32
    %14 = vector.broadcast %c0_i32 : i32 to vector<1x128xi32>
    %15 = arith.cmpi sge, %12, %14 : vector<1x128xi32>
    %c2_i32 = arith.constant 2 : i32
    %16 = vector.broadcast %c2_i32 : i32 to vector<1x128xi32>
    %17 = arith.cmpi slt, %12, %16 : vector<1x128xi32>
    %18 = arith.andi %15, %17 : vector<1x128xi1>
    %19 = arith.ori %13, %18 : vector<1x128xi1>
    %c4_i32 = arith.constant 4 : i32
    %20 = vector.broadcast %c4_i32 : i32 to vector<1x128xi32>
    %21 = arith.cmpi sge, %12, %20 : vector<1x128xi32>
    %c6_i32 = arith.constant 6 : i32
    %22 = vector.broadcast %c6_i32 : i32 to vector<1x128xi32>
    %23 = arith.cmpi slt, %12, %22 : vector<1x128xi32>
    %24 = arith.andi %21, %23 : vector<1x128xi1>
    %25 = arith.ori %19, %24 : vector<1x128xi1>
    %c16_i32 = arith.constant 16 : i32
    %26 = vector.broadcast %c16_i32 : i32 to vector<1x128xi32>
    %27 = arith.cmpi sge, %12, %26 : vector<1x128xi32>
    %c18_i32 = arith.constant 18 : i32
    %28 = vector.broadcast %c18_i32 : i32 to vector<1x128xi32>
    %29 = arith.cmpi slt, %12, %28 : vector<1x128xi32>
    %30 = arith.andi %27, %29 : vector<1x128xi1>
    %31 = arith.ori %25, %30 : vector<1x128xi1>
    %c20_i32 = arith.constant 20 : i32
    %32 = vector.broadcast %c20_i32 : i32 to vector<1x128xi32>
    %33 = arith.cmpi sge, %12, %32 : vector<1x128xi32>
    %c22_i32 = arith.constant 22 : i32
    %34 = vector.broadcast %c22_i32 : i32 to vector<1x128xi32>
    %35 = arith.cmpi slt, %12, %34 : vector<1x128xi32>
    %36 = arith.andi %33, %35 : vector<1x128xi1>
    %37 = arith.ori %31, %36 : vector<1x128xi1>
    %38 = arith.extui %37 : vector<1x128xi1> to vector<1x128xi32>
    %39 = arith.sitofp %38 : vector<1x128xi32> to vector<1x128xf32>
    %40 = vector.broadcast %39 : vector<1x128xf32> to vector<4x128xf32>
    %41 = arith.mulf %11, %40 : vector<4x128xf32>
    %cst_11 = arith.constant dense<0.000000e+00> : vector<4xf32>
    %42 = vector.multi_reduction <add>, %41, %cst_11 [1] : vector<4x128xf32> to vector<4xf32>
    %43 = vector.shape_cast %42 : vector<4xf32> to vector<4x1xf32>
    %cst_12 = arith.constant 1.250000e-01 : f32
    %44 = vector.broadcast %cst_12 : f32 to vector<4x1xf32>
    %45 = arith.mulf %43, %44 : vector<4x1xf32>
    %46 = vector.broadcast %45 : vector<4x1xf32> to vector<4x128xf32>
    %47 = arith.subf %11, %46 : vector<4x128xf32>
    %48 = vector.broadcast %39 : vector<1x128xf32> to vector<4x128xf32>
    %49 = arith.mulf %47, %48 : vector<4x128xf32>
    %50 = arith.mulf %49, %49 : vector<4x128xf32>
    %cst_13 = arith.constant dense<0.000000e+00> : vector<4xf32>
    %51 = vector.multi_reduction <add>, %50, %cst_13 [1] : vector<4x128xf32> to vector<4xf32>
    %52 = vector.shape_cast %51 : vector<4xf32> to vector<4x1xf32>
    %cst_14 = arith.constant 1.250000e-01 : f32
    %53 = vector.broadcast %cst_14 : f32 to vector<4x1xf32>
    %54 = arith.mulf %52, %53 : vector<4x1xf32>
    %55 = vector.broadcast %45 : vector<4x1xf32> to vector<4x128xf32>
    %56 = arith.subf %11, %55 : vector<4x128xf32>
    %cst_15 = arith.constant 9.99999974E-6 : f32
    %57 = vector.broadcast %cst_15 : f32 to vector<4x1xf32>
    %58 = arith.addf %54, %57 : vector<4x1xf32>
    %59 = math.rsqrt %58 : vector<4x1xf32>
    %60 = vector.broadcast %59 : vector<4x1xf32> to vector<4x128xf32>
    %61 = arith.mulf %56, %60 : vector<4x128xf32>
    %c0_16 = arith.constant 0 : index
    %c0_17 = arith.constant 0 : index
    %62 = vector.load %arg2[%c0_16, %c0_17] : memref<4x128xf32, #tpu.memory_space<vmem>>, vector<4x128xf32>
    tpu.vector_store %arg2[%c0_16, %c0_17], %61 {strides = array<i32>} : memref<4x128xf32, #tpu.memory_space<vmem>>, vector<4x128xf32>,
    return
  }
}

</mosaic_0001>

<bundles_post_ra>
// kernel: conv_bn_forward.1
= control target key start
LH: loop header
LB: loop body
LE: loop exit
PB: predicated region body
PF: predicated region fallthrough
CT: control target
= control target key end

     0   :  { %v280_v2 = vmov 0.0|0.0   ;;  %s281_s13 = smov 127   ;;  %s282_s14 = smov 124   ;;  %vm287_vm0 = vmmov 0   ;;  %v288_v4 = vmov 0.0   ;;  %vm20_vm1 = vcmask 1039360   ;;  %s325_s0 = inlined_call_operand.vmem [shape: f32[8,256], index: 0, kind: input, shape index: {}]   ;;  %s326_s1 = inlined_call_operand.vmem [shape: f32[4,72], index: 1, kind: input, shape index: {}]   ;;  %s327_s2 = inlined_call_operand.vmem [shape: f32[4,128], index: 2, kind: output, shape index: {}]  }
   0x1   :  { %v12_v0 = vld [vmem:[%s325_s0] sm:$0xff]  ;;  %v13_v1 = vld [vmem:[%s325_s0 + $0x8] sm:$0xff]  ;;  %220 = vmatprep.subr.bf16.mxu0 %v280_v2  ;;  %s283_s15 = smov 126   ;;  %s284_s16 = smov 123   ;;  %217 = vmatprep.mubr.msk.f32.mxu0 %vm287_vm0, %v288_v4  ;;  %vm34_vm2 = vcmask 1014784   ;;  %vm27_vm3 = vcmask 1031168   ;;  %v147_v41 = vlaneseq }
   0x2   :  { %v243_v3 = vpack.i.bf16 %v13_v1, %v12_v0  ;;  %s285_s17 = smov 122   ;;  %s286_s18 = smov 120   ;;  %vm41_vm4 = vcmask 1006592   ;;  %vm48_vm5 = vcmask 998400   ;;  %vm55_vm6 = vcmask 982016  }
   0x3   :  { %s289_s0 = smov 119   ;;  %s290_s19 = smov 118   ;;  %vm62_vm7 = vcmask 973824   ;;  %vm69_vm8 = vcmask 965632   ;;  %v72_v40 = vld [vmem:[%s326_s1] sm:$0xf] }
   0x4   :  { %244 = vrot.lane.b32.xlu0 %v243_v3, %s281_s13  ;;  %254 = vrot.lane.b32.xlu1 %v243_v3, %s282_s14  ;;  %vm73_vm9 = vcmask 588800   ;;  %v148_v42 = vand.u32 127, %v147_v41 }
   0x6   :  { %vm152_vm10 = vcmp.ge.s32.totalorder %v148_v42, 4  ;;  %vm153_vm11 = vcmp.lt.s32.totalorder %v148_v42, 6  ;;  %vm150_vm12 = vcmp.lt.s32.totalorder %v148_v42, 2  ;;  %vm156_vm14 = vcmp.ge.s32.totalorder %v148_v42, 16 }
   0x7   :  { %vm154_vm13 = vmand %vm152_vm10, %vm153_vm11  ;;  %vm157_vm15 = vcmp.lt.s32.totalorder %v148_v42, 18 }
   0x8   :  { %249 = vrot.lane.b32.xlu0 %v243_v3, %s283_s15  ;;  %259 = vrot.lane.b32.xlu1 %v243_v3, %s284_s16  ;;  %vm155_vm0 = vmor %vm150_vm12, %vm154_vm13 }
   0xc   :  { %264 = vrot.lane.b32.xlu0 %v243_v3, %s285_s17  ;;  %269 = vrot.lane.b32.xlu1 %v243_v3, %s286_s18 }
  0x10   :  { %274 = vrot.lane.b32.xlu0 %v243_v3, %s289_s0  ;;  %65 = vrot.lane.b32.xlu1 %v12_v0, %s290_s19 }
  0x14   :  { %67 = vrot.lane.b32.xlu0 %v13_v1, %s290_s19 }
  0x76   :  { %v245_v5 = vpop.permute.xlu0 %244  ;;  %v255_v6 = vpop.permute.xlu1 %254 }
  0x77   :  { %v247_v7 = vunpack.i.h.bf16 %v245_v5  ;;  %v246_v8 = vunpack.i.l.bf16 %v245_v5  ;;  %v257_v9 = vunpack.i.h.bf16 %v255_v6  ;;  %v256_v10 = vunpack.i.l.bf16 %v255_v6 }
  0x79   :  { %v21_v11 = vsel %vm20_vm1, %v246_v8, %v247_v7  ;;  %v35_v15 = vsel %vm34_vm2, %v256_v10, %v257_v9  ;;  %vm158_vm1 = vmand %vm156_vm14, %vm157_vm15  ;;  %vm160_vm2 = vcmp.ge.s32.totalorder %v148_v42, 20 }
  0x7a   :  { %v250_v12 = vpop.permute.xlu0 %249  ;;  %v221_v13 = vpack.c.bf16 %v21_v11, %v12_v0  ;;  %v260_v14 = vpop.permute.xlu1 %259 }
  0x7b   :  { %v252_v16 = vunpack.i.h.bf16 %v250_v12  ;;  %v251_v17 = vunpack.i.l.bf16 %v250_v12  ;;  %v262_v18 = vunpack.i.h.bf16 %v260_v14  ;;  %v261_v19 = vunpack.i.l.bf16 %v260_v14 }
  0x7c   :  { %222 = vmatpush3.bf16.msra.mxu0 %v221_v13 }
  0x7d   :  { %223 = vmatprep.subr.bf16.mxu0 %v280_v2  ;;  %v28_v20 = vsel %vm27_vm3, %v251_v17, %v252_v16  ;;  %v42_v24 = vsel %vm41_vm4, %v261_v19, %v262_v18  ;;  %vm161_vm3 = vcmp.lt.s32.totalorder %v148_v42, 22  ;;  %vm159_vm4 = vmor %vm155_vm0, %vm158_vm1 }
  0x7e   :  { %v265_v21 = vpop.permute.xlu0 %264  ;;  %v224_v22 = vpack.c.bf16 %v35_v15, %v28_v20  ;;  %v270_v23 = vpop.permute.xlu1 %269 }
  0x7f   :  { %v267_v25 = vunpack.i.h.bf16 %v265_v21  ;;  %v266_v26 = vunpack.i.l.bf16 %v265_v21  ;;  %v272_v27 = vunpack.i.h.bf16 %v270_v23  ;;  %v271_v28 = vunpack.i.l.bf16 %v270_v23 }
  0x80   :  { %225 = vmatpush3.bf16.msra.mxu0 %v224_v22 }
  0x81   :  { %226 = vmatprep.subr.bf16.mxu0 %v280_v2  ;;  %v49_v29 = vsel %vm48_vm5, %v266_v26, %v267_v25  ;;  %v56_v34 = vsel %vm55_vm6, %v271_v28, %v272_v27  ;;  %vm162_vm5 = vmand %vm160_vm2, %vm161_vm3 }
  0x82   :  { %v275_v30 = vpop.permute.xlu0 %274  ;;  %v227_v31 = vpack.c.bf16 %v49_v29, %v42_v24  ;;  %v66_v37 = vpop.permute.xlu1 %65  ;;  %vm163_vm6 = vmor %vm159_vm4, %vm162_vm5 }
  0x83   :  { %v277_v32 = vunpack.i.h.bf16 %v275_v30  ;;  %v276_v33 = vunpack.i.l.bf16 %v275_v30  ;;  %v188_v43 = vsel %vm163_vm6, 1.0, %v288_v4 }
  0x84   :  { %228 = vmatpush3.bf16.msra.mxu0 %v227_v31 }
  0x85   :  { %229 = vmatprep.subr.bf16.mxu0 %v280_v2  ;;  %v63_v35 = vsel %vm62_vm7, %v276_v33, %v277_v32  ;;  %vm167_vm7 = vcmask 1043456  }
  0x86   :  { %v230_v36 = vpack.c.bf16 %v63_v35, %v56_v34  ;;  %v68_v38 = vpop.permute.xlu0 %67 }
  0x87   :  { %v70_v39 = vsel %vm69_vm8, %v66_v37, %v68_v38 }
  0x88   :  { %231 = vmatpush3.bf16.msra.mxu0 %v230_v36 }
  0x89   :  { %215 = vmatprep.subr.mxu0 %v288_v4 }
  0x8c   :  { %216 = vmatpush3.msra.mxu0 %v70_v39 }
  0x8d   :  { %218 = vmatmul.mubr.msk.f32.vlgmr.msra.gmra.mrb[0].mxu0 %vm73_vm9, %v72_v40 }
 0x160   :  { %v143_v44 = vpop.f32.mrb[0].mxu0 }
 0x161   :  { %v166_v45 = vmul.f32 %v188_v43, %v143_v44  ;;  %v219_v46 = vpop.f32.mrb[1].mxu0 }
 0x163   :  { %v168_v47 = vsel %vm167_vm7, %v166_v45, 0.0 }
 0x164   :  { %169 = vadd.xlane.f32.xlu1 %v168_v47 }
 0x1f1   :  { %v170_v48 = vpop.xlane.xlu1 %169 }
 0x1f2   :  { %v171_v49 = vmul.f32 0.125, %v170_v48 }
 0x1f4   :  { %v172_v50 = vsub.f32 %v143_v44, %v171_v49 }
 0x1f6   :  { %v173_v51 = vmul.f32 %v188_v43, %v172_v50 }
 0x1f8   :  { %v174_v52 = vmul.f32 %v173_v51, %v173_v51 }
 0x1fa   :  { %v175_v53 = vsel %vm167_vm7, %v174_v52, 0.0 }
 0x1fb   :  { %176 = vadd.xlane.f32.xlu0 %v175_v53 }
 0x288   :  { %v177_v54 = vpop.xlane.xlu0 %176 }
 0x289   :  { %v178_v55 = vmul.f32 0.125, %v177_v54 }
 0x28b   :  { %v179_v56 = vadd.f32 1e-05, %v178_v55 }
 0x28d   :  { %278 = vrsqrt.f32 %v179_v56 }
 0x297   :  { %v279_v57 = vpop.eup %278 }
 0x298   :  { %v181_v58 = vmul.f32 %v279_v57, %v172_v50 }
 0x29a   :  { %182 = vst [vmem:[%s327_s2] sm:$0xf] %v181_v58 }

</bundles_post_ra>
